<compile_context>
chip_gen: v7x
topology: tpu7x:2x2x1
jax: 0.10.0
libtpu: 0.0.40
codegen_flags: <defaults>
</compile_context>

<pallas_src>
import jax
import jax.numpy as jnp
from jax.experimental import pallas as pl
from jax.experimental.pallas import tpu as pltpu


def _lstm_kernel(x_ref, h0_ref, c0_ref, wih_ref, whh_ref, b_ref,
                 out_ref, hn_ref, cn_ref, gx_sc):
    """Single-invocation LSTM forward.

    x_ref   : (T*B, D)    full sequence, flattened over (time, batch)
    h0/c0   : (B, H)
    wih_ref : (D, 4H)     fused, transposed input weights (gate order i,f,g,o)
    whh_ref : (H, 4H)     fused, transposed recurrent weights
    b_ref   : (1, 4H)     fused bias (b_ih + b_hh)
    out_ref : (T*B, H)
    hn/cn   : (B, H)
    gx_sc   : (T*B, 4H)   VMEM scratch for the hoisted input projection (lane-dense)
    """
    TB, _ = x_ref.shape
    B, H = h0_ref.shape
    T = TB // B

    # --- Prologue: input projection for the whole sequence (no recurrent dep).
    # One (T*B, D) x (D, 4H) MXU matmul; bias folded in here so the serial
    # loop never re-adds / re-broadcasts it. Lane-dense (width 4H = 128) store.
    gx_sc[...] = (jnp.dot(x_ref[...], wih_ref[...],
                          preferred_element_type=jnp.float32)
                  + b_ref[...])

    # --- Hoist recurrent weights out of the unrolled loop (4 full vregs at
    # (32,128) f32); reused every step -> no per-step weight vlds.
    whh = whh_ref[...]

    # --- Recurrence: one lane-dense (B, H) x (H, 4H) MXU matmul + 2 full-lane
    # EUP passes per step. T is a static Python int -> fully unrolled, all
    # slice offsets static.
    h = h0_ref[...]
    c = c0_ref[...]
    for t in range(T):
        r0, r1 = t * B, (t + 1) * B
        gates = gx_sc[r0:r1, :] + jnp.dot(h, whh,
                                          preferred_element_type=jnp.float32)
        sig = jax.nn.sigmoid(gates)   # full-lane EUP pass (i, f, -, o)
        tnh = jnp.tanh(gates)         # full-lane EUP pass (-, -, g, -)
        i_g = sig[:, 0 * H:1 * H]
        f_g = sig[:, 1 * H:2 * H]
        g_g = tnh[:, 2 * H:3 * H]
        o_g = sig[:, 3 * H:4 * H]
        c = f_g * c + i_g * g_g
        h = o_g * jnp.tanh(c)
        out_ref[r0:r1, :] = h.astype(out_ref.dtype)

    # Final states written exactly once.
    hn_ref[...] = h.astype(hn_ref.dtype)
    cn_ref[...] = c.astype(cn_ref.dtype)


def lstm_forward(x, h0, c0, w_ih, w_hh, b_ih, b_hh):
    """x: (T, B, D); h0, c0: (1, B, H); w_ih: (4H, D); w_hh: (4H, H); biases: (4H,)."""
    T, B, D = x.shape
    H = h0.shape[-1]

    # One-time weight prep in plain JAX: fused along the gate axis & transposed
    # so that  x @ wihT == x @ W_ih^T  and  h @ whhT == h @ W_hh^T  with the
    # PyTorch gate blocks (i, f, g, o) laid out contiguously on the lane axis.
    wihT = jnp.asarray(w_ih, jnp.float32).T            # (D, 4H)
    whhT = jnp.asarray(w_hh, jnp.float32).T            # (H, 4H)
    bias = (jnp.asarray(b_ih, jnp.float32)
            + jnp.asarray(b_hh, jnp.float32)).reshape(1, 4 * H)

    x_flat = jnp.asarray(x, jnp.float32).reshape(T * B, D)
    h0_2d = jnp.asarray(h0, jnp.float32).reshape(B, H)
    c0_2d = jnp.asarray(c0, jnp.float32).reshape(B, H)

    out_shapes = (
        jax.ShapeDtypeStruct((T * B, H), jnp.float32),  # output (flattened)
        jax.ShapeDtypeStruct((B, H), jnp.float32),      # h_n
        jax.ShapeDtypeStruct((B, H), jnp.float32),      # c_n
    )

    grid_spec = pltpu.PrefetchScalarGridSpec(
        num_scalar_prefetch=0,
        grid=(1,),  # single invocation: recurrence runs inside the kernel body
        in_specs=[
            pl.BlockSpec((T * B, D), lambda i: (0, 0)),     # x (full, resident)
            pl.BlockSpec((B, H), lambda i: (0, 0)),         # h0
            pl.BlockSpec((B, H), lambda i: (0, 0)),         # c0
            pl.BlockSpec((D, 4 * H), lambda i: (0, 0)),     # fused W_ih^T
            pl.BlockSpec((H, 4 * H), lambda i: (0, 0)),     # fused W_hh^T
            pl.BlockSpec((1, 4 * H), lambda i: (0, 0)),     # fused bias
        ],
        out_specs=[
            pl.BlockSpec((T * B, H), lambda i: (0, 0)),     # output (written back once)
            pl.BlockSpec((B, H), lambda i: (0, 0)),         # h_n
            pl.BlockSpec((B, H), lambda i: (0, 0)),         # c_n
        ],
        scratch_shapes=[
            pltpu.VMEM((T * B, 4 * H), jnp.float32),        # lane-dense input projection
        ],
    )

    out_flat, hn_2d, cn_2d = pl.pallas_call(
        _lstm_kernel,
        out_shape=out_shapes,
        grid_spec=grid_spec,
        compiler_params=pltpu.CompilerParams(
            dimension_semantics=("arbitrary",)),
    )(x_flat, h0_2d, c0_2d, wihT, whhT, bias)

    return (out_flat.reshape(T, B, H),
            hn_2d.reshape(1, B, H),
            cn_2d.reshape(1, B, H))


def _lstm_reference(x, h0, c0, w_ih, w_hh, b_ih, b_hh):
    """Pure-JAX reference with PyTorch LSTM semantics."""
    H = h0.shape[-1]

    def step(carry, x_t):
        h, c = carry
        gates = x_t @ w_ih.T + h @ w_hh.T + b_ih + b_hh
        i = jax.nn.sigmoid(gates[:, 0 * H:1 * H])
        f = jax.nn.sigmoid(gates[:, 1 * H:2 * H])
        g = jnp.tanh(gates[:, 2 * H:3 * H])
        o = jax.nn.sigmoid(gates[:, 3 * H:4 * H])
        c_new = f * c + i * g
        h_new = o * jnp.tanh(c_new)
        return (h_new, c_new), h_new

    (h_n, c_n), ys = jax.lax.scan(step, (h0[0], c0[0]), x)
    return ys, h_n[None], c_n[None]


if __name__ == "__main__":
    # Small shapes consistent with the module: seq=8, batch=2, input_size=16, hidden=32.
    # num_classes / final_fc are unused by forward(); not part of the hot path.
    T, B, D, H = 8, 2, 16, 32

    key = jax.random.PRNGKey(0)
    k_x, k_h, k_c, k_wih, k_whh, k_bih, k_bhh = jax.random.split(key, 7)

    x = jax.random.normal(k_x, (T, B, D), jnp.float32)
    h0 = jax.random.normal(k_h, (1, B, H), jnp.float32)
    c0 = jax.random.normal(k_c, (1, B, H), jnp.float32)

    # PyTorch default init: U(-1/sqrt(H), 1/sqrt(H)).
    bound = 1.0 / (H ** 0.5)
    w_ih = jax.random.uniform(k_wih, (4 * H, D), jnp.float32, -bound, bound)
    w_hh = jax.random.uniform(k_whh, (4 * H, H), jnp.float32, -bound, bound)
    b_ih = jax.random.uniform(k_bih, (4 * H,), jnp.float32, -bound, bound)
    b_hh = jax.random.uniform(k_bhh, (4 * H,), jnp.float32, -bound, bound)

    out, h_n, c_n = lstm_forward(x, h0, c0, w_ih, w_hh, b_ih, b_hh)
    jax.block_until_ready((out, h_n, c_n))

    # Correctness check against pure-JAX reference.
    ref_out, ref_hn, ref_cn = _lstm_reference(x, h0, c0, w_ih, w_hh, b_ih, b_hh)
    assert jnp.allclose(out, ref_out, atol=1e-5, rtol=1e-5)
    assert jnp.allclose(h_n, ref_hn, atol=1e-5, rtol=1e-5)
    assert jnp.allclose(c_n, ref_cn, atol=1e-5, rtol=1e-5)

    print("KERNEL_OK")
</pallas_src>

<mosaic_0001>
module attributes {stable_mosaic.version = 11 : i64} {
  func.func @_lstm_kernel(%arg0: i32, %arg1: memref<16x16xf32, #tpu.memory_space<vmem>>, %arg2: memref<2x32xf32, #tpu.memory_space<vmem>>, %arg3: memref<2x32xf32, #tpu.memory_space<vmem>>, %arg4: memref<16x128xf32, #tpu.memory_space<vmem>>, %arg5: memref<32x128xf32, #tpu.memory_space<vmem>>, %arg6: memref<1x128xf32, #tpu.memory_space<vmem>>, %arg7: memref<16x32xf32, #tpu.memory_space<vmem>>, %arg8: memref<2x32xf32, #tpu.memory_space<vmem>>, %arg9: memref<2x32xf32, #tpu.memory_space<vmem>>, %arg10: memref<16x128xf32, #tpu.memory_space<vmem>>) attributes {dimension_semantics = [#tpu.dimension_semantics<arbitrary>], iteration_bounds = array<i64: 1>, scalar_prefetch = 0 : i64, scratch_operands = 1 : i64, tpu.core_type = #tpu.core_type<tc>, window_params = [{pipeline_mode = #tpu.pipeline_mode<synchronous>, transform_indices = @transform_0, window_bounds = array<i64: 16, 16>}, {pipeline_mode = #tpu.pipeline_mode<synchronous>, transform_indices = @transform_1, window_bounds = array<i64: 2, 32>}, {pipeline_mode = #tpu.pipeline_mode<synchronous>, transform_indices = @transform_2, window_bounds = array<i64: 2, 32>}, {pipeline_mode = #tpu.pipeline_mode<synchronous>, transform_indices = @transform_3, window_bounds = array<i64: 16, 128>}, {pipeline_mode = #tpu.pipeline_mode<synchronous>, transform_indices = @transform_4, window_bounds = array<i64: 32, 128>}, {pipeline_mode = #tpu.pipeline_mode<synchronous>, transform_indices = @transform_5, window_bounds = array<i64: 1, 128>}, {pipeline_mode = #tpu.pipeline_mode<synchronous>, transform_indices = @transform_6, window_bounds = array<i64: 16, 32>}, {pipeline_mode = #tpu.pipeline_mode<synchronous>, transform_indices = @transform_7, window_bounds = array<i64: 2, 32>}, {pipeline_mode = #tpu.pipeline_mode<synchronous>, transform_indices = @transform_8, window_bounds = array<i64: 2, 32>}]} {
    %c0 = arith.constant 0 : index
    %c0_0 = arith.constant 0 : index
    %0 = vector.load %arg1[%c0, %c0_0] : memref<16x16xf32, #tpu.memory_space<vmem>>, vector<16x16xf32>
    %c0_1 = arith.constant 0 : index
    %c0_2 = arith.constant 0 : index
    %1 = vector.load %arg4[%c0_1, %c0_2] : memref<16x128xf32, #tpu.memory_space<vmem>>, vector<16x128xf32>
    %cst = arith.constant dense<0.000000e+00> : vector<16x128xf32>
    %2 = tpu.matmul %0, %1, %cst {dimension_numbers = #tpu.dot_dimension_numbers<[1], [0], [0], [1], [0, 0, 1, 1], [], []>} : vector<16x16xf32>, vector<16x128xf32>, vector<16x128xf32> -> vector<16x128xf32>
    %c0_3 = arith.constant 0 : index
    %c0_4 = arith.constant 0 : index
    %3 = vector.load %arg6[%c0_3, %c0_4] : memref<1x128xf32, #tpu.memory_space<vmem>>, vector<1x128xf32>
    %4 = vector.broadcast %3 : vector<1x128xf32> to vector<16x128xf32>
    %5 = arith.addf %2, %4 : vector<16x128xf32>
    %c0_5 = arith.constant 0 : index
    %c0_6 = arith.constant 0 : index
    %6 = vector.load %arg10[%c0_5, %c0_6] : memref<16x128xf32, #tpu.memory_space<vmem>>, vector<16x128xf32>
    tpu.vector_store %arg10[%c0_5, %c0_6], %5 {strides = array<i32>} : memref<16x128xf32, #tpu.memory_space<vmem>>, vector<16x128xf32>,
    %c0_7 = arith.constant 0 : index
    %c0_8 = arith.constant 0 : index
    %7 = vector.load %arg5[%c0_7, %c0_8] : memref<32x128xf32, #tpu.memory_space<vmem>>, vector<32x128xf32>
    %c0_9 = arith.constant 0 : index
    %c0_10 = arith.constant 0 : index
    %8 = vector.load %arg2[%c0_9, %c0_10] : memref<2x32xf32, #tpu.memory_space<vmem>>, vector<2x32xf32>
    %c0_11 = arith.constant 0 : index
    %c0_12 = arith.constant 0 : index
    %9 = vector.load %arg3[%c0_11, %c0_12] : memref<2x32xf32, #tpu.memory_space<vmem>>, vector<2x32xf32>
    %c0_13 = arith.constant 0 : index
    %c0_14 = arith.constant 0 : index
    %10 = vector.load %arg10[%c0_13, %c0_14] : memref<16x128xf32, #tpu.memory_space<vmem>>, vector<2x128xf32>
    %cst_15 = arith.constant dense<0.000000e+00> : vector<2x128xf32>
    %11 = tpu.matmul %8, %7, %cst_15 {dimension_numbers = #tpu.dot_dimension_numbers<[1], [0], [0], [1], [0, 0, 1, 1], [], []>} : vector<2x32xf32>, vector<32x128xf32>, vector<2x128xf32> -> vector<2x128xf32>
    %12 = arith.addf %10, %11 : vector<2x128xf32>
    %13 = arith.negf %12 : vector<2x128xf32>
    %14 = math.exp %13 : vector<2x128xf32>
    %cst_16 = arith.constant 1.000000e+00 : f32
    %15 = vector.broadcast %cst_16 : f32 to vector<2x128xf32>
    %16 = arith.addf %15, %14 : vector<2x128xf32>
    %17 = arith.divf %15, %16 : vector<2x128xf32>
    %18 = math.tanh %12 : vector<2x128xf32>
    %19 = vector.extract_strided_slice %17 {offsets = [0, 0], sizes = [2, 32], strides = [1, 1]} : vector<2x128xf32> to vector<2x32xf32>
    %20 = vector.extract_strided_slice %17 {offsets = [0, 32], sizes = [2, 32], strides = [1, 1]} : vector<2x128xf32> to vector<2x32xf32>
    %21 = vector.extract_strided_slice %18 {offsets = [0, 64], sizes = [2, 32], strides = [1, 1]} : vector<2x128xf32> to vector<2x32xf32>
    %22 = vector.extract_strided_slice %17 {offsets = [0, 96], sizes = [2, 32], strides = [1, 1]} : vector<2x128xf32> to vector<2x32xf32>
    %23 = arith.mulf %20, %9 : vector<2x32xf32>
    %24 = arith.mulf %19, %21 : vector<2x32xf32>
    %25 = arith.addf %23, %24 : vector<2x32xf32>
    %26 = math.tanh %25 : vector<2x32xf32>
    %27 = arith.mulf %22, %26 : vector<2x32xf32>
    %c0_17 = arith.constant 0 : index
    %c0_18 = arith.constant 0 : index
    %28 = vector.load %arg7[%c0_17, %c0_18] : memref<16x32xf32, #tpu.memory_space<vmem>>, vector<2x32xf32>
    tpu.vector_store %arg7[%c0_17, %c0_18], %27 {strides = array<i32>} : memref<16x32xf32, #tpu.memory_space<vmem>>, vector<2x32xf32>,
    %c2 = arith.constant 2 : index
    %c0_19 = arith.constant 0 : index
    %29 = vector.load %arg10[%c2, %c0_19] : memref<16x128xf32, #tpu.memory_space<vmem>>, vector<2x128xf32>
    %cst_20 = arith.constant dense<0.000000e+00> : vector<2x128xf32>
    %30 = tpu.matmul %27, %7, %cst_20 {dimension_numbers = #tpu.dot_dimension_numbers<[1], [0], [0], [1], [0, 0, 1, 1], [], []>} : vector<2x32xf32>, vector<32x128xf32>, vector<2x128xf32> -> vector<2x128xf32>
    %31 = arith.addf %29, %30 : vector<2x128xf32>
    %32 = arith.negf %31 : vector<2x128xf32>
    %33 = math.exp %32 : vector<2x128xf32>
    %cst_21 = arith.constant 1.000000e+00 : f32
    %34 = vector.broadcast %cst_21 : f32 to vector<2x128xf32>
    %35 = arith.addf %34, %33 : vector<2x128xf32>
    %36 = arith.divf %34, %35 : vector<2x128xf32>
    %37 = math.tanh %31 : vector<2x128xf32>
    %38 = vector.extract_strided_slice %36 {offsets = [0, 0], sizes = [2, 32], strides = [1, 1]} : vector<2x128xf32> to vector<2x32xf32>
    %39 = vector.extract_strided_slice %36 {offsets = [0, 32], sizes = [2, 32], strides = [1, 1]} : vector<2x128xf32> to vector<2x32xf32>
    %40 = vector.extract_strided_slice %37 {offsets = [0, 64], sizes = [2, 32], strides = [1, 1]} : vector<2x128xf32> to vector<2x32xf32>
    %41 = vector.extract_strided_slice %36 {offsets = [0, 96], sizes = [2, 32], strides = [1, 1]} : vector<2x128xf32> to vector<2x32xf32>
    %42 = arith.mulf %39, %25 : vector<2x32xf32>
    %43 = arith.mulf %38, %40 : vector<2x32xf32>
    %44 = arith.addf %42, %43 : vector<2x32xf32>
    %45 = math.tanh %44 : vector<2x32xf32>
    %46 = arith.mulf %41, %45 : vector<2x32xf32>
    %c2_22 = arith.constant 2 : index
    %c0_23 = arith.constant 0 : index
    %47 = vector.load %arg7[%c2_22, %c0_23] : memref<16x32xf32, #tpu.memory_space<vmem>>, vector<2x32xf32>
    tpu.vector_store %arg7[%c2_22, %c0_23], %46 {strides = array<i32>} : memref<16x32xf32, #tpu.memory_space<vmem>>, vector<2x32xf32>,
    %c4 = arith.constant 4 : index
    %c0_24 = arith.constant 0 : index
    %48 = vector.load %arg10[%c4, %c0_24] : memref<16x128xf32, #tpu.memory_space<vmem>>, vector<2x128xf32>
    %cst_25 = arith.constant dense<0.000000e+00> : vector<2x128xf32>
    %49 = tpu.matmul %46, %7, %cst_25 {dimension_numbers = #tpu.dot_dimension_numbers<[1], [0], [0], [1], [0, 0, 1, 1], [], []>} : vector<2x32xf32>, vector<32x128xf32>, vector<2x128xf32> -> vector<2x128xf32>
    %50 = arith.addf %48, %49 : vector<2x128xf32>
    %51 = arith.negf %50 : vector<2x128xf32>
    %52 = math.exp %51 : vector<2x128xf32>
    %cst_26 = arith.constant 1.000000e+00 : f32
    %53 = vector.broadcast %cst_26 : f32 to vector<2x128xf32>
    %54 = arith.addf %53, %52 : vector<2x128xf32>
    %55 = arith.divf %53, %54 : vector<2x128xf32>
    %56 = math.tanh %50 : vector<2x128xf32>
    %57 = vector.extract_strided_slice %55 {offsets = [0, 0], sizes = [2, 32], strides = [1, 1]} : vector<2x128xf32> to vector<2x32xf32>
    %58 = vector.extract_strided_slice %55 {offsets = [0, 32], sizes = [2, 32], strides = [1, 1]} : vector<2x128xf32> to vector<2x32xf32>
    %59 = vector.extract_strided_slice %56 {offsets = [0, 64], sizes = [2, 32], strides = [1, 1]} : vector<2x128xf32> to vector<2x32xf32>
    %60 = vector.extract_strided_slice %55 {offsets = [0, 96], sizes = [2, 32], strides = [1, 1]} : vector<2x128xf32> to vector<2x32xf32>
    %61 = arith.mulf %58, %44 : vector<2x32xf32>
    %62 = arith.mulf %57, %59 : vector<2x32xf32>
    %63 = arith.addf %61, %62 : vector<2x32xf32>
    %64 = math.tanh %63 : vector<2x32xf32>
    %65 = arith.mulf %60, %64 : vector<2x32xf32>
    %c4_27 = arith.constant 4 : index
    %c0_28 = arith.constant 0 : index
    %66 = vector.load %arg7[%c4_27, %c0_28] : memref<16x32xf32, #tpu.memory_space<vmem>>, vector<2x32xf32>
    tpu.vector_store %arg7[%c4_27, %c0_28], %65 {strides = array<i32>} : memref<16x32xf32, #tpu.memory_space<vmem>>, vector<2x32xf32>,
    %c6 = arith.constant 6 : index
    %c0_29 = arith.constant 0 : index
    %67 = vector.load %arg10[%c6, %c0_29] : memref<16x128xf32, #tpu.memory_space<vmem>>, vector<2x128xf32>
    %cst_30 = arith.constant dense<0.000000e+00> : vector<2x128xf32>
    %68 = tpu.matmul %65, %7, %cst_30 {dimension_numbers = #tpu.dot_dimension_numbers<[1], [0], [0], [1], [0, 0, 1, 1], [], []>} : vector<2x32xf32>, vector<32x128xf32>, vector<2x128xf32> -> vector<2x128xf32>
    %69 = arith.addf %67, %68 : vector<2x128xf32>
    %70 = arith.negf %69 : vector<2x128xf32>
    %71 = math.exp %70 : vector<2x128xf32>
    %cst_31 = arith.constant 1.000000e+00 : f32
    %72 = vector.broadcast %cst_31 : f32 to vector<2x128xf32>
    %73 = arith.addf %72, %71 : vector<2x128xf32>
    %74 = arith.divf %72, %73 : vector<2x128xf32>
    %75 = math.tanh %69 : vector<2x128xf32>
    %76 = vector.extract_strided_slice %74 {offsets = [0, 0], sizes = [2, 32], strides = [1, 1]} : vector<2x128xf32> to vector<2x32xf32>
    %77 = vector.extract_strided_slice %74 {offsets = [0, 32], sizes = [2, 32], strides = [1, 1]} : vector<2x128xf32> to vector<2x32xf32>
    %78 = vector.extract_strided_slice %75 {offsets = [0, 64], sizes = [2, 32], strides = [1, 1]} : vector<2x128xf32> to vector<2x32xf32>
    %79 = vector.extract_strided_slice %74 {offsets = [0, 96], sizes = [2, 32], strides = [1, 1]} : vector<2x128xf32> to vector<2x32xf32>
    %80 = arith.mulf %77, %63 : vector<2x32xf32>
    %81 = arith.mulf %76, %78 : vector<2x32xf32>
    %82 = arith.addf %80, %81 : vector<2x32xf32>
    %83 = math.tanh %82 : vector<2x32xf32>
    %84 = arith.mulf %79, %83 : vector<2x32xf32>
    %c6_32 = arith.constant 6 : index
    %c0_33 = arith.constant 0 : index
    %85 = vector.load %arg7[%c6_32, %c0_33] : memref<16x32xf32, #tpu.memory_space<vmem>>, vector<2x32xf32>
    tpu.vector_store %arg7[%c6_32, %c0_33], %84 {strides = array<i32>} : memref<16x32xf32, #tpu.memory_space<vmem>>, vector<2x32xf32>,
    %c8 = arith.constant 8 : index
    %c0_34 = arith.constant 0 : index
    %86 = vector.load %arg10[%c8, %c0_34] : memref<16x128xf32, #tpu.memory_space<vmem>>, vector<2x128xf32>
    %cst_35 = arith.constant dense<0.000000e+00> : vector<2x128xf32>
    %87 = tpu.matmul %84, %7, %cst_35 {dimension_numbers = #tpu.dot_dimension_numbers<[1], [0], [0], [1], [0, 0, 1, 1], [], []>} : vector<2x32xf32>, vector<32x128xf32>, vector<2x128xf32> -> vector<2x128xf32>
    %88 = arith.addf %86, %87 : vector<2x128xf32>
    %89 = arith.negf %88 : vector<2x128xf32>
    %90 = math.exp %89 : vector<2x128xf32>
    %cst_36 = arith.constant 1.000000e+00 : f32
    %91 = vector.broadcast %cst_36 : f32 to vector<2x128xf32>
    %92 = arith.addf %91, %90 : vector<2x128xf32>
    %93 = arith.divf %91, %92 : vector<2x128xf32>
    %94 = math.tanh %88 : vector<2x128xf32>
    %95 = vector.extract_strided_slice %93 {offsets = [0, 0], sizes = [2, 32], strides = [1, 1]} : vector<2x128xf32> to vector<2x32xf32>
    %96 = vector.extract_strided_slice %93 {offsets = [0, 32], sizes = [2, 32], strides = [1, 1]} : vector<2x128xf32> to vector<2x32xf32>
    %97 = vector.extract_strided_slice %94 {offsets = [0, 64], sizes = [2, 32], strides = [1, 1]} : vector<2x128xf32> to vector<2x32xf32>
    %98 = vector.extract_strided_slice %93 {offsets = [0, 96], sizes = [2, 32], strides = [1, 1]} : vector<2x128xf32> to vector<2x32xf32>
    %99 = arith.mulf %96, %82 : vector<2x32xf32>
    %100 = arith.mulf %95, %97 : vector<2x32xf32>
    %101 = arith.addf %99, %100 : vector<2x32xf32>
    %102 = math.tanh %101 : vector<2x32xf32>
    %103 = arith.mulf %98, %102 : vector<2x32xf32>
    %c8_37 = arith.constant 8 : index
    %c0_38 = arith.constant 0 : index
    %104 = vector.load %arg7[%c8_37, %c0_38] : memref<16x32xf32, #tpu.memory_space<vmem>>, vector<2x32xf32>
    tpu.vector_store %arg7[%c8_37, %c0_38], %103 {strides = array<i32>} : memref<16x32xf32, #tpu.memory_space<vmem>>, vector<2x32xf32>,
    %c10 = arith.constant 10 : index
    %c0_39 = arith.constant 0 : index
    %105 = vector.load %arg10[%c10, %c0_39] : memref<16x128xf32, #tpu.memory_space<vmem>>, vector<2x128xf32>
    %cst_40 = arith.constant dense<0.000000e+00> : vector<2x128xf32>
    %106 = tpu.matmul %103, %7, %cst_40 {dimension_numbers = #tpu.dot_dimension_numbers<[1], [0], [0], [1], [0, 0, 1, 1], [], []>} : vector<2x32xf32>, vector<32x128xf32>, vector<2x128xf32> -> vector<2x128xf32>
    %107 = arith.addf %105, %106 : vector<2x128xf32>
    %108 = arith.negf %107 : vector<2x128xf32>
    %109 = math.exp %108 : vector<2x128xf32>
    %cst_41 = arith.constant 1.000000e+00 : f32
    %110 = vector.broadcast %cst_41 : f32 to vector<2x128xf32>
    %111 = arith.addf %110, %109 : vector<2x128xf32>
    %112 = arith.divf %110, %111 : vector<2x128xf32>
    %113 = math.tanh %107 : vector<2x128xf32>
    %114 = vector.extract_strided_slice %112 {offsets = [0, 0], sizes = [2, 32], strides = [1, 1]} : vector<2x128xf32> to vector<2x32xf32>
    %115 = vector.extract_strided_slice %112 {offsets = [0, 32], sizes = [2, 32], strides = [1, 1]} : vector<2x128xf32> to vector<2x32xf32>
    %116 = vector.extract_strided_slice %113 {offsets = [0, 64], sizes = [2, 32], strides = [1, 1]} : vector<2x128xf32> to vector<2x32xf32>
    %117 = vector.extract_strided_slice %112 {offsets = [0, 96], sizes = [2, 32], strides = [1, 1]} : vector<2x128xf32> to vector<2x32xf32>
    %118 = arith.mulf %115, %101 : vector<2x32xf32>
    %119 = arith.mulf %114, %116 : vector<2x32xf32>
    %120 = arith.addf %118, %119 : vector<2x32xf32>
    %121 = math.tanh %120 : vector<2x32xf32>
    %122 = arith.mulf %117, %121 : vector<2x32xf32>
    %c10_42 = arith.constant 10 : index
    %c0_43 = arith.constant 0 : index
    %123 = vector.load %arg7[%c10_42, %c0_43] : memref<16x32xf32, #tpu.memory_space<vmem>>, vector<2x32xf32>
    tpu.vector_store %arg7[%c10_42, %c0_43], %122 {strides = array<i32>} : memref<16x32xf32, #tpu.memory_space<vmem>>, vector<2x32xf32>,
    %c12 = arith.constant 12 : index
    %c0_44 = arith.constant 0 : index
    %124 = vector.load %arg10[%c12, %c0_44] : memref<16x128xf32, #tpu.memory_space<vmem>>, vector<2x128xf32>
    %cst_45 = arith.constant dense<0.000000e+00> : vector<2x128xf32>
    %125 = tpu.matmul %122, %7, %cst_45 {dimension_numbers = #tpu.dot_dimension_numbers<[1], [0], [0], [1], [0, 0, 1, 1], [], []>} : vector<2x32xf32>, vector<32x128xf32>, vector<2x128xf32> -> vector<2x128xf32>
    %126 = arith.addf %124, %125 : vector<2x128xf32>
    %127 = arith.negf %126 : vector<2x128xf32>
    %128 = math.exp %127 : vector<2x128xf32>
    %cst_46 = arith.constant 1.000000e+00 : f32
    %129 = vector.broadcast %cst_46 : f32 to vector<2x128xf32>
    %130 = arith.addf %129, %128 : vector<2x128xf32>
    %131 = arith.divf %129, %130 : vector<2x128xf32>
    %132 = math.tanh %126 : vector<2x128xf32>
    %133 = vector.extract_strided_slice %131 {offsets = [0, 0], sizes = [2, 32], strides = [1, 1]} : vector<2x128xf32> to vector<2x32xf32>
    %134 = vector.extract_strided_slice %131 {offsets = [0, 32], sizes = [2, 32], strides = [1, 1]} : vector<2x128xf32> to vector<2x32xf32>
    %135 = vector.extract_strided_slice %132 {offsets = [0, 64], sizes = [2, 32], strides = [1, 1]} : vector<2x128xf32> to vector<2x32xf32>
    %136 = vector.extract_strided_slice %131 {offsets = [0, 96], sizes = [2, 32], strides = [1, 1]} : vector<2x128xf32> to vector<2x32xf32>
    %137 = arith.mulf %134, %120 : vector<2x32xf32>
    %138 = arith.mulf %133, %135 : vector<2x32xf32>
    %139 = arith.addf %137, %138 : vector<2x32xf32>
    %140 = math.tanh %139 : vector<2x32xf32>
    %141 = arith.mulf %136, %140 : vector<2x32xf32>
    %c12_47 = arith.constant 12 : index
    %c0_48 = arith.constant 0 : index
    %142 = vector.load %arg7[%c12_47, %c0_48] : memref<16x32xf32, #tpu.memory_space<vmem>>, vector<2x32xf32>
    tpu.vector_store %arg7[%c12_47, %c0_48], %141 {strides = array<i32>} : memref<16x32xf32, #tpu.memory_space<vmem>>, vector<2x32xf32>,
    %c14 = arith.constant 14 : index
    %c0_49 = arith.constant 0 : index
    %143 = vector.load %arg10[%c14, %c0_49] : memref<16x128xf32, #tpu.memory_space<vmem>>, vector<2x128xf32>
    %cst_50 = arith.constant dense<0.000000e+00> : vector<2x128xf32>
    %144 = tpu.matmul %141, %7, %cst_50 {dimension_numbers = #tpu.dot_dimension_numbers<[1], [0], [0], [1], [0, 0, 1, 1], [], []>} : vector<2x32xf32>, vector<32x128xf32>, vector<2x128xf32> -> vector<2x128xf32>
    %145 = arith.addf %143, %144 : vector<2x128xf32>
    %146 = arith.negf %145 : vector<2x128xf32>
    %147 = math.exp %146 : vector<2x128xf32>
    %cst_51 = arith.constant 1.000000e+00 : f32
    %148 = vector.broadcast %cst_51 : f32 to vector<2x128xf32>
    %149 = arith.addf %148, %147 : vector<2x128xf32>
    %150 = arith.divf %148, %149 : vector<2x128xf32>
    %151 = math.tanh %145 : vector<2x128xf32>
    %152 = vector.extract_strided_slice %150 {offsets = [0, 0], sizes = [2, 32], strides = [1, 1]} : vector<2x128xf32> to vector<2x32xf32>
    %153 = vector.extract_strided_slice %150 {offsets = [0, 32], sizes = [2, 32], strides = [1, 1]} : vector<2x128xf32> to vector<2x32xf32>
    %154 = vector.extract_strided_slice %151 {offsets = [0, 64], sizes = [2, 32], strides = [1, 1]} : vector<2x128xf32> to vector<2x32xf32>
    %155 = vector.extract_strided_slice %150 {offsets = [0, 96], sizes = [2, 32], strides = [1, 1]} : vector<2x128xf32> to vector<2x32xf32>
    %156 = arith.mulf %153, %139 : vector<2x32xf32>
    %157 = arith.mulf %152, %154 : vector<2x32xf32>
    %158 = arith.addf %156, %157 : vector<2x32xf32>
    %159 = math.tanh %158 : vector<2x32xf32>
    %160 = arith.mulf %155, %159 : vector<2x32xf32>
    %c14_52 = arith.constant 14 : index
    %c0_53 = arith.constant 0 : index
    %161 = vector.load %arg7[%c14_52, %c0_53] : memref<16x32xf32, #tpu.memory_space<vmem>>, vector<2x32xf32>
    tpu.vector_store %arg7[%c14_52, %c0_53], %160 {strides = array<i32>} : memref<16x32xf32, #tpu.memory_space<vmem>>, vector<2x32xf32>,
    %c0_54 = arith.constant 0 : index
    %c0_55 = arith.constant 0 : index
    %162 = vector.load %arg8[%c0_54, %c0_55] : memref<2x32xf32, #tpu.memory_space<vmem>>, vector<2x32xf32>
    tpu.vector_store %arg8[%c0_54, %c0_55], %160 {strides = array<i32>} : memref<2x32xf32, #tpu.memory_space<vmem>>, vector<2x32xf32>,
    %c0_56 = arith.constant 0 : index
    %c0_57 = arith.constant 0 : index
    %163 = vector.load %arg9[%c0_56, %c0_57] : memref<2x32xf32, #tpu.memory_space<vmem>>, vector<2x32xf32>
    tpu.vector_store %arg9[%c0_56, %c0_57], %158 {strides = array<i32>} : memref<2x32xf32, #tpu.memory_space<vmem>>, vector<2x32xf32>,
    return
  }
  func.func @transform_0(%arg0: i32) -> (i32, i32) {
    %c0_i32 = arith.constant 0 : i32
    %c0_i32_0 = arith.constant 0 : i32
    %c0_i32_1 = arith.constant 0 : i32
    return %c0_i32, %c0_i32_0 : i32, i32
  }
  func.func @transform_1(%arg0: i32) -> (i32, i32) {
    %c0_i32 = arith.constant 0 : i32
    %c0_i32_0 = arith.constant 0 : i32
    %c0_i32_1 = arith.constant 0 : i32
    return %c0_i32, %c0_i32_0 : i32, i32
  }
  func.func @transform_2(%arg0: i32) -> (i32, i32) {
    %c0_i32 = arith.constant 0 : i32
    %c0_i32_0 = arith.constant 0 : i32
    %c0_i32_1 = arith.constant 0 : i32
    return %c0_i32, %c0_i32_0 : i32, i32
  }
  func.func @transform_3(%arg0: i32) -> (i32, i32) {
    %c0_i32 = arith.constant 0 : i32
    %c0_i32_0 = arith.constant 0 : i32
    %c0_i32_1 = arith.constant 0 : i32
    return %c0_i32, %c0_i32_0 : i32, i32
  }
  func.func @transform_4(%arg0: i32) -> (i32, i32) {
    %c0_i32 = arith.constant 0 : i32
    %c0_i32_0 = arith.constant 0 : i32
    %c0_i32_1 = arith.constant 0 : i32
    return %c0_i32, %c0_i32_0 : i32, i32
  }
  func.func @transform_5(%arg0: i32) -> (i32, i32) {
    %c0_i32 = arith.constant 0 : i32
    %c0_i32_0 = arith.constant 0 : i32
    %c0_i32_1 = arith.constant 0 : i32
    return %c0_i32, %c0_i32_0 : i32, i32
  }
  func.func @transform_6(%arg0: i32) -> (i32, i32) {
    %c0_i32 = arith.constant 0 : i32
    %c0_i32_0 = arith.constant 0 : i32
    %c0_i32_1 = arith.constant 0 : i32
    return %c0_i32, %c0_i32_0 : i32, i32
  }
  func.func @transform_7(%arg0: i32) -> (i32, i32) {
    %c0_i32 = arith.constant 0 : i32
    %c0_i32_0 = arith.constant 0 : i32
    %c0_i32_1 = arith.constant 0 : i32
    return %c0_i32, %c0_i32_0 : i32, i32
  }
  func.func @transform_8(%arg0: i32) -> (i32, i32) {
    %c0_i32 = arith.constant 0 : i32
    %c0_i32_0 = arith.constant 0 : i32
    %c0_i32_1 = arith.constant 0 : i32
    return %c0_i32, %c0_i32_0 : i32, i32
  }
}

</mosaic_0001>

<bundles_post_ra>
// kernel: tpu_custom_call.1
= control target key start
LH: loop header
LB: loop body
LE: loop exit
PB: predicated region body
PF: predicated region fallthrough
CT: control target
= control target key end

     0   :  { %14 = vsyncpa [#allocation4], 0  ;;  %s1758_s0 = inlined_call_operand.hbm [shape: f32[16,16], index: 0, kind: input, shape index: {}]   ;;  %s1759_s1 = inlined_call_operand.vmem [shape: f32[2,32], index: 1, kind: input, shape index: {}]   ;;  %s1760_s2 = inlined_call_operand.vmem [shape: f32[2,32], index: 2, kind: input, shape index: {}]   ;;  %s1761_s3 = inlined_call_operand.hbm [shape: f32[16,128], index: 3, kind: input, shape index: {}]   ;;  %s1762_s4 = inlined_call_operand.hbm [shape: f32[32,128], index: 4, kind: input, shape index: {}]   ;;  %s1763_s5 = inlined_call_operand.vmem [shape: f32[1,128], index: 5, kind: input, shape index: {}]   ;;  %s1764_s6 = inlined_call_operand.hbm [shape: f32[16,32], index: 6, kind: output, shape index: {0}]   ;;  %s1765_s7 = inlined_call_operand.hbm [shape: f32[2,32], index: 7, kind: output, shape index: {1}]   ;;  %s1766_s8 = inlined_call_operand.hbm [shape: f32[2,32], index: 8, kind: output, shape index: {2}]  }
   0x1   :  { %15 = vsyncpa [#allocation7], 0 }
   0x2   :  { %16 = vsyncpa [#allocation5], 0 }
   0x3   :  { %17 = vsyncpa [#allocation11], 0  ;;  %s1480_s27 = smov [#allocation6]   ;;  %s1481_s29 = smov [#allocation3]  }
   0x4   :  { %s39_s28 = sshll.u32 %s1480_s27, 4  ;;  %s23_s30 = sshll.u32 %s1481_s29, 4  ;;  %s40_s28 = int_to_ptr.vmem [resolvable:$true] %s39_s28  ;;  %s1539_s30 = int_to_ptr.vmem [resolvable:$true] %s23_s30 }
   0x5   :  { %s1340_s11 = scalar_lea.hbm %s1761_s3, 256 }
   0x6   :  { %p1341_p0 = scmp.ne.s32.totalorder %s1761_s3, %s1340_s11  ;;  %p1344_p1 = scmp.lt.u32.totalorder %s1340_s11, %s1761_s3 }
   0x8   :  { %p1346_p2 = pnand %p1344_p1, %p1341_p0 }
   0xa   :  { %1349 = shalt.err (!%p1346_p2)
}
   0xb   :  { %s1350_s16 = scalar_lea.vmem %s40_s28, 256  ;;  %p1355_p4 = scmp.lt.s32.totalorder %s40_s28, %s40_s28 }
   0xc   :  { %p1351_p3 = scmp.ne.s32.totalorder %s40_s28, %s1350_s16  ;;  %p1356_p5 = scmp.lt.s32.totalorder %s1350_s16, %s1350_s16 }
   0xe   :  { %p1357_p6 = por %p1356_p5, %p1355_p4 }
  0x10   :  { %p1358_p7 = pnand %p1357_p6, %p1351_p3 }
  0x12   :  { %1361 = shalt.err (!%p1358_p7)
}
  0x13   :  { %s1482_s17 = smov 128   ;;  %s1483_s18 = smov 8  }
  0x14   :  { %45 = dma.hbm_to_vmem [thread:$0]  %s1761_s3, 256, %s40_s28, [#allocation7], %s1482_s17, %s1482_s17, %s1483_s18  }
  0x15   :  { %s1362_s23 = scalar_lea.hbm %s1758_s0, 256 }
  0x16   :  { %p1363_p8 = scmp.ne.s32.totalorder %s1758_s0, %s1362_s23  ;;  %p1366_p9 = scmp.lt.u32.totalorder %s1362_s23, %s1758_s0 }
  0x18   :  { %p1368_p10 = pnand %p1366_p9, %p1363_p8 }
  0x1a   :  { %1371 = shalt.err (!%p1368_p10)
}
  0x1b   :  { %s1372_s29 = scalar_lea.vmem %s1539_s30, 256  ;;  %p1377_p12 = scmp.lt.s32.totalorder %s1539_s30, %s1539_s30 }
  0x1c   :  { %p1373_p11 = scmp.ne.s32.totalorder %s1539_s30, %s1372_s29  ;;  %p1378_p13 = scmp.lt.s32.totalorder %s1372_s29, %s1372_s29 }
  0x1e   :  { %p1379_p0 = por %p1378_p13, %p1377_p12 }
  0x20   :  { %p1380_p1 = pnand %p1379_p0, %p1373_p11 }
  0x22   :  { %1383 = shalt.err (!%p1380_p1)
}
  0x23   :  { %29 = dma.hbm_to_vmem [thread:$0]  %s1758_s0, 256, %s1539_s30, [#allocation4], %s1482_s17, %s1482_s17, %s1483_s18  }
  0x24   :  { %s1484_s9 = smov [#allocation8]   ;;  %s1384_s13 = scalar_lea.hbm %s1762_s4, 512 }
  0x25   :  { %s51_s10 = sshll.u32 %s1484_s9, 4  ;;  %p1385_p2 = scmp.ne.s32.totalorder %s1762_s4, %s1384_s13  ;;  %s52_s10 = int_to_ptr.vmem [resolvable:$true] %s51_s10 }
  0x26   :  { %p1388_p3 = scmp.lt.u32.totalorder %s1384_s13, %s1762_s4 }
  0x28   :  { %p1390_p4 = pnand %p1388_p3, %p1385_p2 }
  0x2a   :  { %1393 = shalt.err (!%p1390_p4)
}
  0x2b   :  { %s1394_s20 = scalar_lea.vmem %s52_s10, 512  ;;  %p1399_p6 = scmp.lt.s32.totalorder %s52_s10, %s52_s10 }
  0x2c   :  { %p1395_p5 = scmp.ne.s32.totalorder %s52_s10, %s1394_s20  ;;  %p1400_p7 = scmp.lt.s32.totalorder %s1394_s20, %s1394_s20 }
  0x2e   :  { %p1401_p8 = por %p1400_p7, %p1399_p6 }
  0x30   :  { %p1402_p9 = pnand %p1401_p8, %p1395_p5 }
  0x32   :  { %1405 = shalt.err (!%p1402_p9)
}
  0x33   :  { %57 = dma.hbm_to_vmem [thread:$0]  %s1762_s4, 512, %s52_s10, [#allocation7], %s1482_s17, %s1482_s17, %s1483_s18  }
  0x34   :  { %1472 = dma.done.wait [#allocation4], 256  }
  0x35   :  { %1473 = vsyncadd [#allocation4], 4294967040 }
  0x36   :  { %1474 = dma.done.wait [#allocation7], 768  }
  0x37   :  { %1475 = vsyncadd [#allocation7], 4294966528  ;;  %v1485_v0 = vmov 0.0|0.0   ;;  %vm1486_vm0 = vmmov 0   ;;  %v1487_v1 = vmov 0.0   ;;  %vm80_vm1 = vcmask 130048  }
  0x38   :  { %1214 = vmatprep.subr.bf16.mxu1 %v1485_v0  ;;  %1130 = vmatprep.mubr.msk.f32.mxu1 %vm1486_vm0, %v1487_v1  ;;  %v71_v2 = vld [vmem:[#allocation6] sm:$0xff]  ;;  %v72_v3 = vld [vmem:[#allocation6 + $0x8] sm:$0xff]  ;;  %v69_v4 = vld [vmem:[#allocation3] sm:$0xff]  ;;  %vm171_vm2 = vcmask 261120   ;;  %s1488_s23 = smov 64   ;;  %vm278_vm3 = vcmask 254976  }
  0x39   :  { %v1210_v5 = vpack.c.bf16 %v72_v3, %v71_v2  ;;  %1119 = vmatprep.mubr.msk.f32.mxu0 %vm80_vm1, %v69_v4  ;;  %v164_v6 = vld [vmem:[#allocation8] sm:$0xff]  ;;  %v165_v7 = vld [vmem:[#allocation8 + $0x8] sm:$0xff]  ;;  %v166_v9 = vld [vmem:[#allocation8 + $0x10] sm:$0xff]  ;;  %s1491_s26 = smov [#allocation10]   ;;  %s1492_s29 = smov [#allocation9]  }
  0x3a   :  { %v1595_v8 = vpack.c.bf16 %v165_v7, %v164_v6  ;;  %v167_v10 = vld [vmem:[#allocation8 + $0x18] sm:$0xff]  ;;  %v70_v11 = vld [vmem:[#allocation3 + $0x8] sm:$0xff]  ;;  %v168_v13 = vld [vmem:[%s1759_s1] sm:$0x3]  ;;  %s1025_s27 = sshll.u32 %s1491_s26, 4  ;;  %s1012_s3 = sshll.u32 %s1492_s29, 4  ;;  %s1026_s27 = int_to_ptr.vmem [resolvable:$true] %s1025_s27  ;;  %s1703_s3 = int_to_ptr.vmem [resolvable:$true] %s1012_s3 }
  0x3b   :  { %1211 = vmatprep.subr.bf16.mxu0 %v1210_v5  ;;  %v1598_v12 = vpack.c.bf16 %v167_v10, %v166_v9  ;;  %v1052_v14 = vld [vmem:[%s1763_s5] ss:$0 sm:$0xff]  ;;  %s1489_s5 = smov 32   ;;  %s1493_s28 = smov [#allocation12]  }
  0x3c   :  { %1213 = vmatpush3.bf16.msra.mxu0 %v1210_v5  ;;  %1216 = vmatpush3.bf16.msra.mxu1 %v1595_v8  ;;  %v169_v24 = vld [vmem:[%s1760_s2] sm:$0x3]  ;;  %s1490_s2 = smov 96   ;;  %s1035_s9 = sshll.u32 %s1493_s28, 4  ;;  %s1707_s9 = int_to_ptr.vmem [resolvable:$true] %s1035_s9 }
  0x3d   :  { %1217 = vmatprep.subr.bf16.mxu1 %v1485_v0  ;;  %1220 = vmatprep.subr.bf16.mxu0 %v1485_v0  ;;  %s1406_s10 = scalar_lea.vmem %s1026_s27, 32  ;;  %p1411_p11 = scmp.lt.s32.totalorder %s1026_s27, %s1026_s27 }
  0x3e   :  { %p1407_p10 = scmp.ne.s32.totalorder %s1026_s27, %s1406_s10  ;;  %p1412_p12 = scmp.lt.s32.totalorder %s1406_s10, %s1406_s10 }
  0x3f   :  { %1120 = vmatmul.mubr.msk.f32.vlgmr.msra.gmra.mrb[0].mxu0 %vm80_vm1, %v70_v11 }
  0x40   :  { %1219 = vmatpush3.bf16.msra.mxu1 %v1598_v12  ;;  %1222 = vmatpush3.bf16.msra.mxu0 %v1595_v8  ;;  %p1413_p13 = por %p1412_p12, %p1411_p11 }
  0x41   :  { %1223 = vmatprep.subr.bf16.mxu0 %v1485_v0  ;;  %1141 = vmatprep.mubr.msk.f32.mxu0 %vm1486_vm0, %v1487_v1 }
  0x42   :  { %1226 = vmatprep.subr.bf16.mxu1 %v1485_v0  ;;  %p1414_p0 = pnand %p1413_p13, %p1407_p10 }
  0x43   :  { %1131 = vmatmul.mubr.msk.f32.vlgmr.msra.gmra.mrb[0].mxu1 %vm171_vm2, %v168_v13 }
  0x44   :  { %1225 = vmatpush3.bf16.msra.mxu0 %v1598_v12  ;;  %1228 = vmatpush3.bf16.msra.mxu1 %v1595_v8 }
  0x45   :  { %1229 = vmatprep.subr.bf16.mxu1 %v1485_v0  ;;  %1152 = vmatprep.mubr.msk.f32.mxu1 %vm1486_vm0, %v1487_v1 }
  0x46   :  { %1232 = vmatprep.subr.bf16.mxu0 %v1485_v0 }
  0x48   :  { %1231 = vmatpush3.bf16.msra.mxu1 %v1598_v12 }
  0x49   :  { %1238 = vmatprep.subr.bf16.mxu1 %v1485_v0 }
 0x112   :  { %v1121_v15 = vpop.f32.mrb[0].mxu0 }
 0x113   :  { %v159_v16 = vadd.f32 %v1121_v15, %v1052_v14  ;;  %v153_v17 = vpop.f32.mrb[1].mxu0 }
 0x114   :  { %v154_v18 = vadd.f32 %v1052_v14, %v153_v17 }
 0x115   :  { %163 = vst [vmem:[#allocation2 + $0x8] sm:$0xff] %v159_v16 }
 0x116   :  { %162 = vst [vmem:[#allocation2] sm:$0xff] %v154_v18  ;;  %v241_v19 = vpop.f32.mrb[0].mxu1 }
 0x117   :  { %v1132_v20 = vpop.f32.mrb[1].mxu1 }
 0x11d   :  { %v170_v21 = vld [vmem:[#allocation2] sm:$0x3]  ;;  %v280_v39 = vld [vmem:[#allocation2 + $0x2] sm:$0x3]  ;;  %v383_v57 = vld [vmem:[#allocation2 + $0x4] sm:$0x3] }
 0x11e   :  { %v245_v22 = vadd.f32 %v241_v19, %v170_v21  ;;  %v486_v15 = vld [vmem:[#allocation2 + $0x6] sm:$0x3] }
 0x120   :  { %1276 = vtanh.f32 %v245_v22  ;;  %v1056_v25 = vmul.f32 -1.442695, %v245_v22 }
 0x122   :  { %1278 = vpow2.f32 %v1056_v25 }
 0x12a   :  { %v1277_v23 = vpop.eup %1276 }
 0x12b   :  { %259 = vrot.lane.b32.xlu0 %v1277_v23, %s1488_s23 }
 0x12c   :  { %v1279_v26 = vpop.eup %1278 }
 0x12d   :  { %v249_v27 = vadd.f32 1.0, %v1279_v26 }
 0x12f   :  { %254 = vrot.lane.b32.xlu0 %v169_v24, %s1489_s5  ;;  %1280 = vrcp.f32 %v249_v27 }
 0x139   :  { %v1281_v28 = vpop.eup %1280 }
 0x19d   :  { %v260_v29 = vpop.permute.xlu0 %259 }
 0x19e   :  { %v262_v30 = vmul.f32 %v1281_v28, %v260_v29 }
 0x1a0   :  { %264 = vrot.lane.b32.xlu1 %v262_v30, %s1489_s5 }
 0x1a1   :  { %v255_v31 = vpop.permute.xlu0 %254 }
 0x1a2   :  { %v257_v32 = vmul.f32 %v1281_v28, %v255_v31 }
 0x212   :  { %v265_v33 = vpop.permute.xlu1 %264 }
 0x213   :  { %v267_v34 = vadd.f32 %v265_v33, %v257_v32  ;;  %v589_v33 = vld [vmem:[#allocation2 + $0x8] sm:$0x3] }
 0x215   :  { %1282 = vtanh.f32 %v267_v34 }
 0x21f   :  { %v1283_v35 = vpop.eup %1282 }
 0x220   :  { %270 = vrot.lane.b32.xlu1 %v1283_v35, %s1488_s23 }
 0x292   :  { %v271_v36 = vpop.permute.xlu1 %270 }
 0x293   :  { %v273_v37 = vmul.f32 %v1281_v28, %v271_v36 }
 0x295   :  { %275 = vrot.lane.b32.xlu0 %v273_v37, %s1489_s5 }
 0x307   :  { %v276_v38 = vpop.permute.xlu0 %275 }
 0x308   :  { %279 = vst.msk [vmem:[#allocation9] sm:$0x3] %vm278_vm3, %v276_v38  ;;  %1142 = vmatmul.mubr.msk.f32.vlgmr.msra.gmra.mrb[2].mxu0 %vm171_vm2, %v276_v38 }
 0x309   :  { %1234 = vmatpush3.bf16.msra.mxu0 %v1595_v8  ;;  %1163 = vmatprep.mubr.msk.f32.mxu0 %vm1486_vm0, %v1487_v1 }
 0x30a   :  { %1235 = vmatprep.subr.bf16.mxu0 %v1485_v0 }
 0x30d   :  { %1237 = vmatpush3.bf16.msra.mxu0 %v1598_v12 }
 0x30e   :  { %1244 = vmatprep.subr.bf16.mxu0 %v1485_v0 }
 0x3db   :  { %v349_v40 = vpop.f32.mrb[2].mxu0 }
 0x3dc   :  { %v353_v41 = vadd.f32 %v349_v40, %v280_v39  ;;  %v1143_v42 = vpop.f32.mrb[3].mxu0 }
 0x3de   :  { %1284 = vtanh.f32 %v353_v41  ;;  %v1058_v44 = vmul.f32 -1.442695, %v353_v41 }
 0x3e0   :  { %1286 = vpow2.f32 %v1058_v44 }
 0x3e8   :  { %v1285_v43 = vpop.eup %1284 }
 0x3e9   :  { %363 = vrot.lane.b32.xlu1 %v1285_v43, %s1488_s23 }
 0x3ea   :  { %v1287_v45 = vpop.eup %1286 }
 0x3eb   :  { %v357_v46 = vadd.f32 1.0, %v1287_v45 }
 0x3ed   :  { %1288 = vrcp.f32 %v357_v46 }
 0x3f7   :  { %v1289_v47 = vpop.eup %1288 }
 0x3f8   :  { %v361_v50 = vmul.f32 %v1289_v47, %v267_v34 }
 0x45b   :  { %v364_v48 = vpop.permute.xlu1 %363 }
 0x45c   :  { %v366_v49 = vmul.f32 %v1289_v47, %v364_v48 }
 0x45e   :  { %368 = vrot.lane.b32.xlu0 %v366_v49, %s1489_s5 }
 0x4d0   :  { %v369_v51 = vpop.permute.xlu0 %368 }
 0x4d1   :  { %v371_v52 = vadd.f32 %v369_v51, %v361_v50  ;;  %v692_v51 = vld [vmem:[#allocation2 + $0xa] sm:$0x3] }
 0x4d3   :  { %1290 = vtanh.f32 %v371_v52 }
 0x4dd   :  { %v1291_v53 = vpop.eup %1290 }
 0x4de   :  { %374 = vrot.lane.b32.xlu1 %v1291_v53, %s1488_s23 }
 0x550   :  { %v375_v54 = vpop.permute.xlu1 %374 }
 0x551   :  { %v377_v55 = vmul.f32 %v1289_v47, %v375_v54 }
 0x553   :  { %379 = vrot.lane.b32.xlu0 %v377_v55, %s1489_s5 }
 0x5c5   :  { %v380_v56 = vpop.permute.xlu0 %379 }
 0x5c6   :  { %382 = vst.msk [vmem:[#allocation9 + $0x2] sm:$0x3] %vm278_vm3, %v380_v56  ;;  %1153 = vmatmul.mubr.msk.f32.vlgmr.msra.gmra.mrb[2].mxu1 %vm171_vm2, %v380_v56 }
 0x5c7   :  { %1240 = vmatpush3.bf16.msra.mxu1 %v1595_v8  ;;  %1174 = vmatprep.mubr.msk.f32.mxu1 %vm1486_vm0, %v1487_v1 }
 0x5c8   :  { %1241 = vmatprep.subr.bf16.mxu1 %v1485_v0 }
 0x5cb   :  { %1243 = vmatpush3.bf16.msra.mxu1 %v1598_v12 }
 0x5cc   :  { %1250 = vmatprep.subr.bf16.mxu1 %v1485_v0 }
 0x699   :  { %v452_v58 = vpop.f32.mrb[2].mxu1 }
 0x69a   :  { %v456_v59 = vadd.f32 %v452_v58, %v383_v57  ;;  %v1154_v60 = vpop.f32.mrb[3].mxu1 }
 0x69c   :  { %1292 = vtanh.f32 %v456_v59  ;;  %v1060_v62 = vmul.f32 -1.442695, %v456_v59 }
 0x69e   :  { %1294 = vpow2.f32 %v1060_v62 }
 0x6a6   :  { %v1293_v61 = vpop.eup %1292 }
 0x6a7   :  { %466 = vrot.lane.b32.xlu1 %v1293_v61, %s1488_s23 }
 0x6a8   :  { %v1295_v63 = vpop.eup %1294 }
 0x6a9   :  { %v460_v2 = vadd.f32 1.0, %v1295_v63 }
 0x6ab   :  { %1296 = vrcp.f32 %v460_v2 }
 0x6b5   :  { %v1297_v3 = vpop.eup %1296 }
 0x6b6   :  { %v464_v6 = vmul.f32 %v1297_v3, %v371_v52 }
 0x719   :  { %v467_v4 = vpop.permute.xlu1 %466 }
 0x71a   :  { %v469_v5 = vmul.f32 %v1297_v3, %v467_v4 }
 0x71c   :  { %471 = vrot.lane.b32.xlu0 %v469_v5, %s1489_s5 }
 0x78e   :  { %v472_v7 = vpop.permute.xlu0 %471 }
 0x78f   :  { %v474_v9 = vadd.f32 %v472_v7, %v464_v6 }
 0x791   :  { %1298 = vtanh.f32 %v474_v9 }
 0x79b   :  { %v1299_v10 = vpop.eup %1298 }
 0x79c   :  { %477 = vrot.lane.b32.xlu1 %v1299_v10, %s1488_s23 }
 0x80e   :  { %v478_v11 = vpop.permute.xlu1 %477 }
 0x80f   :  { %v480_v13 = vmul.f32 %v1297_v3, %v478_v11  ;;  %v795_v3 = vld [vmem:[#allocation2 + $0xc] sm:$0x3] }
 0x811   :  { %482 = vrot.lane.b32.xlu0 %v480_v13, %s1489_s5 }
 0x883   :  { %v483_v14 = vpop.permute.xlu0 %482 }
 0x884   :  { %485 = vst.msk [vmem:[#allocation9 + $0x4] sm:$0x3] %vm278_vm3, %v483_v14  ;;  %1164 = vmatmul.mubr.msk.f32.vlgmr.msra.gmra.mrb[4].mxu0 %vm171_vm2, %v483_v14 }
 0x885   :  { %1246 = vmatpush3.bf16.msra.mxu0 %v1595_v8  ;;  %1185 = vmatprep.mubr.msk.f32.mxu0 %vm1486_vm0, %v1487_v1 }
 0x886   :  { %1247 = vmatprep.subr.bf16.mxu0 %v1485_v0 }
 0x889   :  { %1249 = vmatpush3.bf16.msra.mxu0 %v1598_v12 }
 0x88a   :  { %1256 = vmatprep.subr.bf16.mxu0 %v1485_v0 }
 0x957   :  { %v555_v16 = vpop.f32.mrb[4].mxu0 }
 0x958   :  { %v559_v17 = vadd.f32 %v555_v16, %v486_v15  ;;  %v1165_v18 = vpop.f32.mrb[5].mxu0 }
 0x95a   :  { %1300 = vtanh.f32 %v559_v17  ;;  %v1062_v20 = vmul.f32 -1.442695, %v559_v17 }
 0x95c   :  { %1302 = vpow2.f32 %v1062_v20 }
 0x964   :  { %v1301_v19 = vpop.eup %1300 }
 0x965   :  { %569 = vrot.lane.b32.xlu1 %v1301_v19, %s1488_s23 }
 0x966   :  { %v1303_v21 = vpop.eup %1302 }
 0x967   :  { %v563_v22 = vadd.f32 1.0, %v1303_v21 }
 0x969   :  { %1304 = vrcp.f32 %v563_v22 }
 0x973   :  { %v1305_v23 = vpop.eup %1304 }
 0x974   :  { %v567_v26 = vmul.f32 %v1305_v23, %v474_v9 }
 0x9d7   :  { %v570_v24 = vpop.permute.xlu1 %569 }
 0x9d8   :  { %v572_v25 = vmul.f32 %v1305_v23, %v570_v24 }
 0x9da   :  { %574 = vrot.lane.b32.xlu0 %v572_v25, %s1489_s5 }
 0xa4c   :  { %v575_v27 = vpop.permute.xlu0 %574 }
 0xa4d   :  { %v577_v28 = vadd.f32 %v575_v27, %v567_v26 }
 0xa4f   :  { %1306 = vtanh.f32 %v577_v28 }
 0xa59   :  { %v1307_v29 = vpop.eup %1306 }
 0xa5a   :  { %580 = vrot.lane.b32.xlu1 %v1307_v29, %s1488_s23 }
 0xacc   :  { %v581_v30 = vpop.permute.xlu1 %580 }
 0xacd   :  { %v583_v31 = vmul.f32 %v1305_v23, %v581_v30  ;;  %v898_v23 = vld [vmem:[#allocation2 + $0xe] sm:$0x3] }
 0xacf   :  { %585 = vrot.lane.b32.xlu0 %v583_v31, %s1489_s5 }
 0xb41   :  { %v586_v32 = vpop.permute.xlu0 %585 }
 0xb42   :  { %588 = vst.msk [vmem:[#allocation9 + $0x6] sm:$0x3] %vm278_vm3, %v586_v32  ;;  %1175 = vmatmul.mubr.msk.f32.vlgmr.msra.gmra.mrb[4].mxu1 %vm171_vm2, %v586_v32 }
 0xb43   :  { %1252 = vmatpush3.bf16.msra.mxu1 %v1595_v8  ;;  %1196 = vmatprep.mubr.msk.f32.mxu1 %vm1486_vm0, %v1487_v1 }
 0xb44   :  { %1253 = vmatprep.subr.bf16.mxu1 %v1485_v0 }
 0xb47   :  { %1255 = vmatpush3.bf16.msra.mxu1 %v1598_v12 }
 0xc15   :  { %v658_v34 = vpop.f32.mrb[4].mxu1 }
 0xc16   :  { %v662_v35 = vadd.f32 %v658_v34, %v589_v33  ;;  %v1176_v36 = vpop.f32.mrb[5].mxu1 }
 0xc18   :  { %1308 = vtanh.f32 %v662_v35  ;;  %v1064_v38 = vmul.f32 -1.442695, %v662_v35 }
 0xc1a   :  { %1310 = vpow2.f32 %v1064_v38 }
 0xc22   :  { %v1309_v37 = vpop.eup %1308 }
 0xc23   :  { %672 = vrot.lane.b32.xlu1 %v1309_v37, %s1488_s23 }
 0xc24   :  { %v1311_v39 = vpop.eup %1310 }
 0xc25   :  { %v666_v40 = vadd.f32 1.0, %v1311_v39 }
 0xc27   :  { %1312 = vrcp.f32 %v666_v40 }
 0xc31   :  { %v1313_v41 = vpop.eup %1312 }
 0xc32   :  { %v670_v44 = vmul.f32 %v1313_v41, %v577_v28 }
 0xc95   :  { %v673_v42 = vpop.permute.xlu1 %672 }
 0xc96   :  { %v675_v43 = vmul.f32 %v1313_v41, %v673_v42 }
 0xc98   :  { %677 = vrot.lane.b32.xlu0 %v675_v43, %s1489_s5 }
 0xd0a   :  { %v678_v45 = vpop.permute.xlu0 %677 }
 0xd0b   :  { %v680_v46 = vadd.f32 %v678_v45, %v670_v44 }
 0xd0d   :  { %1314 = vtanh.f32 %v680_v46 }
 0xd17   :  { %v1315_v47 = vpop.eup %1314 }
 0xd18   :  { %683 = vrot.lane.b32.xlu1 %v1315_v47, %s1488_s23 }
 0xd8a   :  { %v684_v48 = vpop.permute.xlu1 %683 }
 0xd8b   :  { %v686_v49 = vmul.f32 %v1313_v41, %v684_v48 }
 0xd8d   :  { %688 = vrot.lane.b32.xlu0 %v686_v49, %s1489_s5 }
 0xdff   :  { %v689_v50 = vpop.permute.xlu0 %688 }
 0xe00   :  { %691 = vst.msk [vmem:[#allocation9 + $0x8] sm:$0x3] %vm278_vm3, %v689_v50  ;;  %1186 = vmatmul.mubr.msk.f32.vlgmr.msra.gmra.mrb[6].mxu0 %vm171_vm2, %v689_v50 }
 0xe01   :  { %1258 = vmatpush3.bf16.msra.mxu0 %v1595_v8  ;;  %1207 = vmatprep.mubr.msk.f32.mxu0 %vm1486_vm0, %v1487_v1 }
 0xe02   :  { %1259 = vmatprep.subr.bf16.mxu0 %v1485_v0 }
 0xe05   :  { %1261 = vmatpush3.bf16.msra.mxu0 %v1598_v12 }
 0xed3   :  { %v761_v52 = vpop.f32.mrb[6].mxu0 }
 0xed4   :  { %v765_v53 = vadd.f32 %v761_v52, %v692_v51  ;;  %v1187_v54 = vpop.f32.mrb[7].mxu0 }
 0xed6   :  { %1316 = vtanh.f32 %v765_v53  ;;  %v1066_v56 = vmul.f32 -1.442695, %v765_v53 }
 0xed8   :  { %1318 = vpow2.f32 %v1066_v56 }
 0xee0   :  { %v1317_v55 = vpop.eup %1316 }
 0xee1   :  { %775 = vrot.lane.b32.xlu1 %v1317_v55, %s1488_s23 }
 0xee2   :  { %v1319_v57 = vpop.eup %1318 }
 0xee3   :  { %v769_v58 = vadd.f32 1.0, %v1319_v57 }
 0xee5   :  { %1320 = vrcp.f32 %v769_v58 }
 0xeef   :  { %v1321_v8 = vpop.eup %1320 }
 0xef0   :  { %v773_v0 = vmul.f32 %v1321_v8, %v680_v46 }
 0xf53   :  { %v776_v59 = vpop.permute.xlu1 %775 }
 0xf54   :  { %v778_v1 = vmul.f32 %v1321_v8, %v776_v59 }
 0xf56   :  { %780 = vrot.lane.b32.xlu0 %v778_v1, %s1489_s5 }
 0xfc8   :  { %v781_v12 = vpop.permute.xlu0 %780 }
 0xfc9   :  { %v783_v60 = vadd.f32 %v781_v12, %v773_v0 }
 0xfcb   :  { %1322 = vtanh.f32 %v783_v60 }
 0xfd5   :  { %v1323_v61 = vpop.eup %1322 }
 0xfd6   :  { %786 = vrot.lane.b32.xlu1 %v1323_v61, %s1488_s23 }
0x1048   :  { %v787_v62 = vpop.permute.xlu1 %786 }
0x1049   :  { %v789_v63 = vmul.f32 %v1321_v8, %v787_v62 }
0x104b   :  { %791 = vrot.lane.b32.xlu0 %v789_v63, %s1489_s5 }
0x10bd   :  { %v792_v2 = vpop.permute.xlu0 %791 }
0x10be   :  { %794 = vst.msk [vmem:[#allocation9 + $0xa] sm:$0x3] %vm278_vm3, %v792_v2  ;;  %1197 = vmatmul.mubr.msk.f32.vlgmr.msra.gmra.mrb[6].mxu1 %vm171_vm2, %v792_v2 }
0x1191   :  { %v864_v4 = vpop.f32.mrb[6].mxu1 }
0x1192   :  { %v868_v5 = vadd.f32 %v864_v4, %v795_v3  ;;  %v1198_v6 = vpop.f32.mrb[7].mxu1 }
0x1194   :  { %1324 = vtanh.f32 %v868_v5  ;;  %v1068_v9 = vmul.f32 -1.442695, %v868_v5 }
0x1196   :  { %1326 = vpow2.f32 %v1068_v9 }
0x119e   :  { %v1325_v7 = vpop.eup %1324 }
0x119f   :  { %878 = vrot.lane.b32.xlu1 %v1325_v7, %s1488_s23 }
0x11a0   :  { %v1327_v10 = vpop.eup %1326 }
0x11a1   :  { %v872_v11 = vadd.f32 1.0, %v1327_v10 }
0x11a3   :  { %1328 = vrcp.f32 %v872_v11 }
0x11ad   :  { %v1329_v13 = vpop.eup %1328 }
0x11ae   :  { %v876_v16 = vmul.f32 %v1329_v13, %v783_v60 }
0x1211   :  { %v879_v14 = vpop.permute.xlu1 %878 }
0x1212   :  { %v881_v15 = vmul.f32 %v1329_v13, %v879_v14 }
0x1214   :  { %883 = vrot.lane.b32.xlu0 %v881_v15, %s1489_s5 }
0x1286   :  { %v884_v17 = vpop.permute.xlu0 %883 }
0x1287   :  { %v886_v18 = vadd.f32 %v884_v17, %v876_v16 }
0x1289   :  { %1330 = vtanh.f32 %v886_v18 }
0x1293   :  { %v1331_v19 = vpop.eup %1330 }
0x1294   :  { %889 = vrot.lane.b32.xlu1 %v1331_v19, %s1488_s23 }
0x1306   :  { %v890_v20 = vpop.permute.xlu1 %889 }
0x1307   :  { %v892_v21 = vmul.f32 %v1329_v13, %v890_v20 }
0x1309   :  { %894 = vrot.lane.b32.xlu0 %v892_v21, %s1489_s5 }
0x137b   :  { %v895_v22 = vpop.permute.xlu0 %894 }
0x137c   :  { %897 = vst.msk [vmem:[#allocation9 + $0xc] sm:$0x3] %vm278_vm3, %v895_v22  ;;  %1208 = vmatmul.mubr.msk.f32.vlgmr.msra.gmra.mrb[8].mxu0 %vm171_vm2, %v895_v22 }
0x144f   :  { %v967_v24 = vpop.f32.mrb[8].mxu0 }
0x1450   :  { %v971_v25 = vadd.f32 %v967_v24, %v898_v23  ;;  %v1209_v26 = vpop.f32.mrb[9].mxu0 }
0x1452   :  { %1332 = vtanh.f32 %v971_v25  ;;  %v1070_v28 = vmul.f32 -1.442695, %v971_v25 }
0x1454   :  { %1334 = vpow2.f32 %v1070_v28 }
0x145c   :  { %v1333_v27 = vpop.eup %1332 }
0x145d   :  { %981 = vrot.lane.b32.xlu1 %v1333_v27, %s1488_s23 }
0x145e   :  { %v1335_v29 = vpop.eup %1334 }
0x145f   :  { %v975_v30 = vadd.f32 1.0, %v1335_v29 }
0x1461   :  { %1336 = vrcp.f32 %v975_v30 }
0x146b   :  { %v1337_v31 = vpop.eup %1336 }
0x146c   :  { %v979_v34 = vmul.f32 %v1337_v31, %v886_v18 }
0x14cf   :  { %v982_v32 = vpop.permute.xlu1 %981 }
0x14d0   :  { %v984_v33 = vmul.f32 %v1337_v31, %v982_v32 }
0x14d2   :  { %986 = vrot.lane.b32.xlu0 %v984_v33, %s1489_s5 }
0x1544   :  { %v987_v35 = vpop.permute.xlu0 %986 }
0x1545   :  { %v989_v36 = vadd.f32 %v987_v35, %v979_v34 }
0x1547   :  { %1338 = vtanh.f32 %v989_v36 }
0x1551   :  { %v1339_v37 = vpop.eup %1338 }
0x1552   :  { %992 = vrot.lane.b32.xlu1 %v1339_v37, %s1488_s23 }
0x1556   :  { %1003 = vrot.lane.b32.xlu1 %v989_v36, %s1490_s2 }
0x15c4   :  { %v993_v38 = vpop.permute.xlu1 %992 }
0x15c5   :  { %v995_v39 = vmul.f32 %v1337_v31, %v993_v38 }
0x15c7   :  { %997 = vrot.lane.b32.xlu0 %v995_v39, %s1489_s5 }
0x15c8   :  { %v1004_v40 = vpop.permute.xlu1 %1003 }
0x15c9   :  { %1006 = vst.msk [vmem:[#allocation12] sm:$0x3] %vm278_vm3, %v1004_v40 }
0x1639   :  { %v998_v41 = vpop.permute.xlu0 %997 }
0x163a   :  { %1000 = vst.msk [vmem:[#allocation9 + $0xe] sm:$0x3] %vm278_vm3, %v998_v41  ;;  %1001 = vst.msk [vmem:[#allocation10] sm:$0x3] %vm278_vm3, %v998_v41 }
0x163b   :  { %1417 = shalt.err (!%p1414_p0)
}
0x163c   :  { %s1418_s13 = scalar_lea.hbm %s1765_s7, 32 }
0x163d   :  { %p1419_p1 = scmp.ne.s32.totalorder %s1765_s7, %s1418_s13  ;;  %p1422_p2 = scmp.lt.u32.totalorder %s1418_s13, %s1765_s7 }
0x163f   :  { %p1424_p3 = pnand %p1422_p2, %p1419_p1 }
0x1641   :  { %1427 = shalt.err (!%p1424_p3)
}
0x1642   :  { %1028 = dma.vmem_to_hbm [thread:$0]  %s1026_s27, 32, %s1765_s7, [#allocation11]  }
0x1643   :  { %s1428_s30 = scalar_lea.vmem %s1703_s3, 256  ;;  %p1433_p5 = scmp.lt.s32.totalorder %s1703_s3, %s1703_s3 }
0x1644   :  { %p1429_p4 = scmp.ne.s32.totalorder %s1703_s3, %s1428_s30  ;;  %p1434_p6 = scmp.lt.s32.totalorder %s1428_s30, %s1428_s30 }
0x1646   :  { %p1435_p7 = por %p1434_p6, %p1433_p5 }
0x1648   :  { %p1436_p8 = pnand %p1435_p7, %p1429_p4 }
0x164a   :  { %1439 = shalt.err (!%p1436_p8)
}
0x164b   :  { %s1440_s1 = scalar_lea.hbm %s1764_s6, 256 }
0x164c   :  { %p1441_p9 = scmp.ne.s32.totalorder %s1764_s6, %s1440_s1  ;;  %p1444_p10 = scmp.lt.u32.totalorder %s1440_s1, %s1764_s6 }
0x164e   :  { %p1446_p11 = pnand %p1444_p10, %p1441_p9 }
0x1650   :  { %1449 = shalt.err (!%p1446_p11)
}
0x1651   :  { %1018 = dma.vmem_to_hbm [thread:$0]  %s1703_s3, 256, %s1764_s6, [#allocation5], %s1482_s17, %s1482_s17, %s1483_s18  }
0x1652   :  { %s1450_s2 = scalar_lea.vmem %s1707_s9, 32  ;;  %p1455_p13 = scmp.lt.s32.totalorder %s1707_s9, %s1707_s9 }
0x1653   :  { %p1451_p12 = scmp.ne.s32.totalorder %s1707_s9, %s1450_s2  ;;  %p1456_p0 = scmp.lt.s32.totalorder %s1450_s2, %s1450_s2 }
0x1655   :  { %p1457_p1 = por %p1456_p0, %p1455_p13 }
0x1657   :  { %p1458_p2 = pnand %p1457_p1, %p1451_p12 }
0x1659   :  { %1461 = shalt.err (!%p1458_p2)
}
0x165a   :  { %s1462_s29 = scalar_lea.hbm %s1766_s8, 32 }
0x165b   :  { %p1463_p3 = scmp.ne.s32.totalorder %s1766_s8, %s1462_s29  ;;  %p1466_p4 = scmp.lt.u32.totalorder %s1462_s29, %s1766_s8 }
0x165d   :  { %p1468_p5 = pnand %p1466_p4, %p1463_p3 }
0x165f   :  { %1471 = shalt.err (!%p1468_p5)
}
0x1660   :  { %1038 = dma.vmem_to_hbm [thread:$0]  %s1707_s9, 32, %s1766_s8, [#allocation11]  }
0x1661   :  { %1476 = dma.done.wait [#allocation5], 256  }
0x1662   :  { %1477 = vsyncadd [#allocation5], 4294967040 }
0x1663   :  { %1478 = dma.done.wait [#allocation11], 64  }
0x1664   :  { %1479 = vsyncadd [#allocation11], 4294967232 }
0x1665   :  { %1048 = vsyncpa [#allocation4], 1 }
0x1666   :  { %1049 = vsyncpa [#allocation7], 1 }
0x1667   :  { %1050 = vsyncpa [#allocation5], 1 }
0x1668   :  { %1051 = vsyncpa [#allocation11], 1 }

</bundles_post_ra>
